<compile_context>
chip_gen: v6e
topology: v6e:2x2x1
jax: 0.10.0
libtpu: 0.0.40
codegen_flags: <defaults>
</compile_context>

<pallas_src>
import jax
import jax.numpy as jnp
from jax.experimental import pallas as pl
from jax.experimental.pallas import tpu as pltpu

_LANE = 128
_SUBLANE = 8


def _round_up(x, m):
    return (x + m - 1) // m * m


def _cdiv(a, b):
    return -(-a // b)


def _bias_kernel(bias_ref, img_ref, snd_ref, out_ref):
    # bias_ref: (1,)          SMEM  -- learnable scalar bias
    # img_ref : (BT, C)       VMEM  -- per-batch channel weights
    # snd_ref : (BT, C, HWT)  VMEM  -- feat_sound tile (spatial flattened, lane-dense)
    # out_ref : (BT, HWT)     VMEM  -- lane-dense 2-D output tile
    C = snd_ref.shape[1]
    acc = jnp.zeros(out_ref.shape, jnp.float32)
    # Contraction over C on the VPU/XLU (an M=1 MXU matmul would waste 127/255
    # of the MXU rows and pay push/FIFO latency while the kernel is HBM-bound).
    # Process C in sublane-sized chunks: the f32 upcast / product temporary is
    # bounded by one (BT, <=8, HWT) slice instead of the whole (BT, C, HWT)
    # tile, keeping VMEM/vreg pressure low even with large tiles.
    for c0 in range(0, C, _SUBLANE):
        c1 = min(c0 + _SUBLANE, C)
        img_b = img_ref[:, c0:c1].astype(jnp.float32)            # (BT, cc)
        snd_b = snd_ref[:, c0:c1, :].astype(jnp.float32)         # (BT, cc, HWT)
        acc = acc + jnp.sum(img_b[:, :, None] * snd_b, axis=1)   # (BT, HWT) f32
    out_ref[...] = (acc + bias_ref[0]).astype(out_ref.dtype)


def bias_forward(feat_img, feat_sound, bias, *,
                 snd_block_bytes=2 * 1024 * 1024,
                 vmem_limit_bytes=32 * 1024 * 1024):
    """feat_img: (B, C) [or (B,1,C)], feat_sound: (B, C, H, W), bias: (1,).

    Returns (B, 1, H, W) = bmm(feat_img, feat_sound.reshape(B,C,HW)) + bias.
    """
    B, C, H, W = feat_sound.shape
    HW = H * W
    out_dtype = feat_sound.dtype
    itemsize = jnp.dtype(out_dtype).itemsize
    Cp = _round_up(C, _SUBLANE)          # sublane-padded C (true VMEM footprint)

    # ---- batch tile ----------------------------------------------------------
    # BT must be a multiple of 8 or equal to the full batch ((8,128) rule on the
    # 2-D img / out blocks).  Start at 8 (or full B if smaller); grown below.
    BT = B if B < _SUBLANE else _SUBLANE

    # ---- spatial (lane) tile -------------------------------------------------
    # No wrapper padding: HWT is a multiple of 128 (or the full HW) capped by a
    # per-buffer VMEM budget; a cdiv grid masks only the last partial tile.
    hwt_cap = max(_LANE, (snd_block_bytes // (BT * Cp * itemsize)) // _LANE * _LANE)
    HWT = HW if HW <= hwt_cap else hwt_cap
    grid_j = _cdiv(HW, HWT)

    # ---- grow the batch tile to fill the per-step budget ----------------------
    if B >= _SUBLANE:
        hwt_padded = _round_up(HWT, _LANE)
        bt_cap = snd_block_bytes // (Cp * hwt_padded * itemsize)
        BT = max(_SUBLANE, min((B // _SUBLANE) * _SUBLANE,
                               (bt_cap // _SUBLANE) * _SUBLANE))
    grid_i = _cdiv(B, BT)

    # ---- keep >= 2 grid steps so both v7x TensorCores get work ----------------
    if grid_i * grid_j < 2:
        if BT >= 2 * _SUBLANE:                       # prefer splitting the batch
            BT = _round_up(_cdiv(B, 2), _SUBLANE)    # (keeps lane tiles large)
            grid_i = _cdiv(B, BT)
        elif HW > _LANE:                             # otherwise split spatial
            HWT = _round_up(_cdiv(HW, 2), _LANE)
            grid_j = _cdiv(HW, HWT)

    # ---- wrapper-side plumbing (free reshapes only; no pads, no extra passes) --
    feat_img2 = feat_img.reshape(B, C)
    snd_flat = feat_sound.reshape(B, C, HW)
    bias_f32 = bias.reshape(1).astype(jnp.float32)   # 32-bit scalar for SMEM

    out_flat = pl.pallas_call(
        _bias_kernel,
        out_shape=jax.ShapeDtypeStruct((B, HW), out_dtype),
        grid_spec=pltpu.PrefetchScalarGridSpec(
            num_scalar_prefetch=0,
            grid=(grid_i, grid_j),                   # spatial axis innermost:
            in_specs=[                               # feat_img block constant in j
                pl.BlockSpec(memory_space=pltpu.MemorySpace.SMEM),   # bias (1,)
                pl.BlockSpec((BT, C), lambda i, j: (i, 0)),          # feat_img
                pl.BlockSpec((BT, C, HWT), lambda i, j: (i, 0, j)),  # feat_sound
            ],
            out_specs=pl.BlockSpec((BT, HWT), lambda i, j: (i, j)),
        ),
        compiler_params=pltpu.CompilerParams(
            dimension_semantics=("parallel", "parallel"),
            vmem_limit_bytes=vmem_limit_bytes),
    )(bias_f32, feat_img2, snd_flat)

    return out_flat.reshape(B, 1, H, W)


if __name__ == "__main__":
    key = jax.random.PRNGKey(0)
    k1, k2 = jax.random.split(key)

    B, C, H, W = 2, 4, 16, 16
    feat_img = jax.random.normal(k1, (B, C), dtype=jnp.float32)
    feat_sound = jax.random.normal(k2, (B, C, H, W), dtype=jnp.float32)

    # nn.Parameter(torch.zeros(1)) -> deterministic zero-initialized scalar bias
    bias = jnp.zeros((1,), dtype=jnp.float32)

    z = bias_forward(feat_img, feat_sound, bias)
    z = jax.block_until_ready(z)

    # reference check (plain JAX einsum, same math as torch.bmm + bias)
    ref = jnp.einsum("bc,bchw->bhw", feat_img, feat_sound)[:, None] + bias[0]
    assert z.shape == (B, 1, H, W)
    assert jnp.allclose(z, ref, atol=1e-5, rtol=1e-5)

    print("KERNEL_OK")
</pallas_src>

<mosaic_0001>
module attributes {stable_mosaic.version = 11 : i64} {
  func.func @_bias_kernel(%arg0: i32, %arg1: i32, %arg2: memref<1xf32, #tpu.memory_space<smem>>, %arg3: memref<2x4xf32, #tpu.memory_space<vmem>>, %arg4: memref<2x4x128xf32, #tpu.memory_space<vmem>>, %arg5: memref<2x128xf32, #tpu.memory_space<vmem>>) attributes {dimension_semantics = [#tpu.dimension_semantics<parallel>, #tpu.dimension_semantics<parallel>], iteration_bounds = array<i64: 1, 2>, scalar_prefetch = 0 : i64, scratch_operands = 0 : i64, tpu.core_type = #tpu.core_type<tc>, window_params = [{transform_indices = @transform_0, window_bounds = array<i64: 1>}, {transform_indices = @transform_1, window_bounds = array<i64: 2, 4>}, {transform_indices = @transform_2, window_bounds = array<i64: 2, 4, 128>}, {transform_indices = @transform_3, window_bounds = array<i64: 2, 128>}]} {
    %cst = arith.constant 0.000000e+00 : f32
    %0 = vector.broadcast %cst : f32 to vector<2x128xf32>
    %c0 = arith.constant 0 : index
    %c0_0 = arith.constant 0 : index
    %1 = vector.load %arg3[%c0, %c0_0] : memref<2x4xf32, #tpu.memory_space<vmem>>, vector<2x4xf32>
    %c0_1 = arith.constant 0 : index
    %c0_2 = arith.constant 0 : index
    %c0_3 = arith.constant 0 : index
    %2 = vector.load %arg4[%c0_1, %c0_2, %c0_3] : memref<2x4x128xf32, #tpu.memory_space<vmem>>, vector<2x4x128xf32>
    %3 = vector.shape_cast %1 : vector<2x4xf32> to vector<2x4x1xf32>
    %4 = vector.broadcast %3 : vector<2x4x1xf32> to vector<2x4x128xf32>
    %5 = arith.mulf %4, %2 : vector<2x4x128xf32>
    %cst_4 = arith.constant dense<0.000000e+00> : vector<2x128xf32>
    %6 = vector.multi_reduction <add>, %5, %cst_4 [1] : vector<2x4x128xf32> to vector<2x128xf32>
    %7 = arith.addf %0, %6 : vector<2x128xf32>
    %c0_5 = arith.constant 0 : index
    %8 = memref.load %arg2[%c0_5] : memref<1xf32, #tpu.memory_space<smem>>
    %9 = vector.broadcast %8 : f32 to vector<2x128xf32>
    %10 = arith.addf %7, %9 : vector<2x128xf32>
    %c0_6 = arith.constant 0 : index
    %c0_7 = arith.constant 0 : index
    %11 = vector.load %arg5[%c0_6, %c0_7] : memref<2x128xf32, #tpu.memory_space<vmem>>, vector<2x128xf32>
    tpu.vector_store %arg5[%c0_6, %c0_7], %10 {strides = array<i32>} : memref<2x128xf32, #tpu.memory_space<vmem>>, vector<2x128xf32>,
    return
  }
  func.func @transform_0(%arg0: i32, %arg1: i32) -> i32 {
    %c0_i32 = arith.constant 0 : i32
    %c0_i32_0 = arith.constant 0 : i32
    return %c0_i32 : i32
  }
  func.func @transform_1(%arg0: i32, %arg1: i32) -> (i32, i32) {
    %c0_i32 = arith.constant 0 : i32
    %c0_i32_0 = arith.constant 0 : i32
    return %arg0, %c0_i32 : i32, i32
  }
  func.func @transform_2(%arg0: i32, %arg1: i32) -> (i32, i32, i32) {
    %c0_i32 = arith.constant 0 : i32
    %c0_i32_0 = arith.constant 0 : i32
    return %arg0, %c0_i32, %arg1 : i32, i32, i32
  }
  func.func @transform_3(%arg0: i32, %arg1: i32) -> (i32, i32) {
    %c0_i32 = arith.constant 0 : i32
    return %arg0, %arg1 : i32, i32
  }
}

</mosaic_0001>

<bundles_post_ra>
// kernel: tpu_custom_call.1
= control target key start
LH: loop header
LB: loop body
LE: loop exit
PB: predicated region body
PF: predicated region fallthrough
CT: control target
= control target key end

     0   :  { %s742_s0 = inlined_call_operand.<no memory space> [shape: f32[1], index: 0, kind: input, shape index: {}]   ;;  %s743_s1 = inlined_call_operand.vmem [shape: f32[2,4], index: 1, kind: input, shape index: {}]   ;;  %s744_s2 = inlined_call_operand.hbm [shape: f32[2,4,256], index: 2, kind: input, shape index: {}]   ;;  %s745_s3 = inlined_call_operand.hbm [shape: f32[2,256], index: 3, kind: output, shape index: {}]  }
   0x1   :  { %8 = sst [smem:[#allocation2]] %s742_s0 }
   0x2   :  { %9 = vsyncpa [#allocation4], 0 }
   0x3   :  { %11 = vsyncpa [#allocation4 + $0x1], 0 }
   0x4   :  { %12 = vsyncpa [#allocation5], 0 }
   0x5   :  { %14 = vsyncpa [#allocation5 + $0x1], 0  ;;  %s602_s14 = smov 0   ;;  %s604_s15 = smov 0  }
   0x6   :  { %s606_s16 = smov 0   ;;  %s608_s17 = smov 0  }
   0x7   :  { %s610_s18 = smov 0   ;;  %s612_s19 = smov 0  }
   0x8 LB: > { %s385_s0 = sadd.s32 4294967295, %s572_s19   ;;  %s386_s20 = sadd.s32 4294967294, %s572_s19   ;;  %s572_s19 = sphi %s612_s19, %s20_s19   ;;  %s568_s18 = sphi %s610_s18, %s756_s18   ;;  %s564_s17 = sphi %s608_s17, %s755_s17   ;;  %s560_s16 = sphi %s606_s16, %s754_s16   ;;  %s556_s15 = sphi %s604_s15, %s753_s15   ;;  %s552_s14 = sphi %s602_s14, %s752_s14  }
   0x9   : > { %s29_s21 = sadd.s32 1, %s568_s18  ;;  %s88_s22 = sadd.s32 1, %s560_s16 }
   0xa   : > { %p30_p0 = scmp.ge.s32.totalorder %s29_s21, 2  ;;  %p95_p1 = scmp.ne.s32.totalorder %s560_s16, %s556_s15 }
   0xb   : > { %p96_p2 = scmp.eq.s32.totalorder %s572_s19, 0  ;;  %p101_p3 = scmp.ne.s32.totalorder %s556_s15, %s552_s14 }
   0xc   : > { %s758_s21 = smov (%p30_p0, %s29_s21), 0  ;;  %p102_p5 = scmp.eq.s32.totalorder %s385_s0, 0 }
   0xd   : > { %p643_p4 = por %p96_p2, %p95_p1  ;;  %s84_s24 = ssub.s32 %s568_s18, %s758_s21 }
   0xe   : > { %p127_p6 = scmp.eq.s32.totalorder %s385_s0, 1  ;;  %p86_p7 = scmp.eq.s32.totalorder %s84_s24, 0 }
   0xf   : > { %p649_p8 = por %p102_p5, %p101_p3  ;;  %p133_p10 = scmp.eq.s32.totalorder %s386_s20, 1 }
  0x10   : > { %p653_p9 = por %p127_p6, %p95_p1  ;;  %p411_p13 = scmp.lt.s32.totalorder %s572_s19, 2 }
  0x11   : > { %s658_s27 = scalar_select %p86_p7, %s560_s16, %s88_s22  }
  0x12   : > { %p660_p11 = por %p133_p10, %p101_p3  ;;  %s163_s29 = sand.u32 1, %s560_s16  }
  0x13   : > { %s390_s30 = sshll.u32 %s163_s29, 3  ;;  %s391_s4 = sshll.u32 %s568_s18, 6 }
  0x14   : > { %s175_s7 = scalar_lea.hbm %s744_s2, %s391_s4  ;;  %s167_s8 = scalar_lea.vmem [#allocation3], %s390_s30 }
  0x15   : > { %s176_s9 = sshll.u32 %s167_s8, 4  ;;  %p673_p0 = pnand %p411_p13, %p643_p4  ;;  %s177_s9 = int_to_ptr.vmem [resolvable:$true] %s176_s9 }
  0x16   : > { %s164_s11 = scalar_lea.sflag [#allocation4], %s163_s29  ;;  %s477_s12 = scalar_lea.vmem %s177_s9, 128 }
  0x17   : > { %p466_p1 = pneg %p673_p0  ;;  %p478_p2 = scmp.ne.s32.totalorder %s177_s9, %s477_s12 }
  0x18   : > { %s574_s13 = smov [#allocation3]  }
  0x19   : > { %p480_p3 = pnand %p478_p2, %p466_p1  ;;  %s482_s0 = sshll.u32 %s574_s13, 4  ;;  %s483_s0 = int_to_ptr.vmem [resolvable:$false] %s482_s0 }
  0x1a   : > { %s484_s20 = scalar_lea.vmem %s483_s0, 256  ;;  %p485_p6 = scmp.lt.s32.totalorder %s177_s9, %s483_s0 }
  0x1b   : > { %p481_p5 = pneg %p480_p3  ;;  %p486_p7 = scmp.lt.s32.totalorder %s484_s20, %s477_s12 }
  0x1d   : > { %p487_p10 = por %p486_p7, %p485_p6 }
  0x1f   : > { %p488_p12 = pnand %p487_p10, %p481_p5 }
  0x21   : > { %491 = shalt.err (!%p488_p12)
}
  0x22   : > { %s575_s22 = smov 128   ;;  %s576_s23 = smov 64  }
  0x23   : > { %s577_s24 = smov 4   ;;  %p392_p4 = scmp.ge.s32.totalorder %s572_s19, 1 }
  0x24   : > { %406 = dma.hbm_to_vmem [thread:$0]  (!%p673_p0), %s175_s7, 128, %s177_s9, %s164_s11, %s575_s22, %s576_s23, %s577_s24  }
  0x25   : > { %p184_p13 = scmp.lt.s32.totalorder %s572_s19, 3 }
  0x27   : > { %p185_p1 = pnand %p392_p4, %p184_p13 }
  0x28   : > { %s684_s29 = sand.u32 (!%p185_p1), 1, %s556_s15  }
  0x29   : > { %188 = sbr.rel (%p185_p1) target bundleno = 205 (0xcd), region = 32  ;;  %s393_s30 = sshll.u32 (!%p185_p1), %s684_s29, 3 }
  0x2a   : > { %s191_s4 = scalar_lea.sflag (!%p185_p1), [#allocation4], %s684_s29  ;;  %s194_s5 = scalar_lea.vmem (!%p185_p1), [#allocation3], %s393_s30 }
  0x2e   : > { %543 = dma.done.wait (%p649_p8), %s191_s4, 128  }
  0x2f   : > { %545 = vsyncadd (%p649_p8), %s191_s4, 4294967168  ;;  %v229_v0 = vlaneseq  ;;  %v226_v4 = vld [vmem:[%s743_s1] sm:$0x3]  ;;  %vm245_vm0 = vcmask 1043456   ;;  %v228_v10 = vld [vmem:[%s194_s5 + $0x4] sm:$0xf] }
  0x30   : > { %v227_v7 = vld [vmem:[%s194_s5] sm:$0xf]  ;;  %s262_s25 = sld [smem:[#allocation2]]  ;;  %s394_s8 = sshll.u32 %s684_s29, 1  ;;  %vm268_vm1 = vcmask 1041409  }
  0x31   : > { %v230_v1 = vshrl.u32 %v229_v0, 7  ;;  %s396_s9 = sshll.u32 %s564_s17, 5  ;;  %s220_s10 = scalar_lea.vmem [#allocation6], %s394_s8 }
  0x32   : > { %s288_s11 = sshll.u32 %s220_s10, 4  ;;  %s700_s0 = scalar_lea.hbm %s745_s3, %s396_s9  ;;  %s289_s11 = int_to_ptr.vmem [resolvable:$true] %s288_s11 }
  0x33   : > { %v231_v2 = vsub.s32 0, %v230_v1  ;;  %v238_v3 = vsub.s32 1, %v230_v1  ;;  %s273_s20 = scalar_lea.sflag [#allocation5], %s684_s29  ;;  %s492_s22 = scalar_lea.vmem %s289_s11, 32 }
  0x34   : > { %p493_p8 = scmp.ne.s32.totalorder %s289_s11, %s492_s22  ;;  %s578_s17 = smov [#allocation6]  }
  0x35   : > { %v232_v5 = vrot.slane %v226_v4, %v231_v2  ;;  %v239_v6 = vrot.slane %v226_v4, %v238_v3  ;;  %s496_s23 = sshll.u32 %s578_s17, 4  ;;  %s497_s23 = int_to_ptr.vmem [resolvable:$false] %s496_s23 }
  0x36   : > { %v263_v26 = vstv %s262_s25  ;;  %p494_p12 = pnand %p493_p8, %p653_p9  ;;  %s498_s24 = scalar_lea.vmem %s497_s23, 64 }
  0x37   : > { %234 = vbcast.lane.b32.xlu0 %v232_v5, 256  ;;  %p499_p2 = scmp.lt.s32.totalorder %s289_s11, %s497_s23  ;;  %p500_p3 = scmp.lt.s32.totalorder %s498_s24, %s492_s22 }
  0x38   : > { %p495_p0 = pneg %p494_p12 }
  0x39   : > { %p501_p5 = por %p500_p3, %p499_p2 }
  0x3b   : > { %241 = vbcast.lane.b32.xlu0 %v239_v6, 256  ;;  %p502_p6 = pnand %p501_p5, %p495_p0 }
  0xa9   : > { %v235_v8 = vpop.permute.xlu0 %234 }
  0xaa   : > { %v243_v9 = vmul.f32 %v235_v8, %v227_v7 }
  0xac   : > { %v246_v11 = vsel %vm245_vm0, %v243_v9, 0.0 }
  0xad   : > { %v247_v12 = vrot.slane %v246_v11, 4  ;;  %v242_v13 = vpop.permute.xlu0 %241 }
  0xae   : > { %v244_v14 = vmul.f32 %v242_v13, %v228_v10 }
  0xaf   : > { %v248_v15 = vadd.f32 %v247_v12, %v246_v11 }
  0xb0   : > { %v253_v16 = vsel %vm245_vm0, %v244_v14, 0.0 }
  0xb1   : > { %v249_v17 = vrot.slane %v248_v15, 2  ;;  %v254_v18 = vrot.slane %v253_v16, 4 }
  0xb3   : > { %v250_v19 = vadd.f32 %v249_v17, %v248_v15  ;;  %v255_v20 = vadd.f32 %v254_v18, %v253_v16 }
  0xb5   : > { %v251_v21 = vrot.slane %v250_v19, 1  ;;  %v256_v22 = vrot.slane %v255_v20, 2 }
  0xb7   : > { %v257_v23 = vadd.f32 %v256_v22, %v255_v20  ;;  %v252_v24 = vadd.f32 %v251_v21, %v250_v19 }
  0xb9   : > { %v258_v25 = vrot.slane %v257_v23, 1  ;;  %v264_v28 = vadd.f32 %v263_v26, %v252_v24 }
  0xbb   : > { %v259_v27 = vadd.f32 %v258_v25, %v257_v23 }
  0xbd   : > { %v265_v29 = vadd.f32 %v263_v26, %v259_v27 }
  0xbf   : > { %v269_v30 = vsel %vm268_vm1, %v265_v29, %v264_v28 }
  0xc0   : > { %271 = vst [vmem:[%s220_s10] sm:$0x3] %v269_v30 }
  0xc1   : > { %505 = shalt.err (!%p502_p6)
}
  0xc2   : > { %s506_s30 = scalar_lea.hbm %s700_s0, 32  ;;  %s510_s5 = scalar_lea.hbm %s745_s3, 64 }
  0xc3   : > { %p507_p7 = scmp.ne.s32.totalorder %s700_s0, %s506_s30  ;;  %p511_p13 = scmp.lt.s32.totalorder %s700_s0, %s745_s3 }
  0xc4   : > { %p512_p1 = scmp.lt.s32.totalorder %s510_s5, %s506_s30 }
  0xc5   : > { %p508_p10 = pnand %p507_p7, %p653_p9 }
  0xc6   : > { %p513_p8 = por %p512_p1, %p511_p13 }
  0xc7   : > { %p509_p4 = pneg %p508_p10 }
  0xc9   : > { %p514_p12 = pnand %p513_p8, %p509_p4 }
  0xcb   : > { %517 = shalt.err (!%p514_p12)
}
  0xcc   : > { %401 = dma.vmem_to_hbm [thread:$0]  (%p653_p9), %s289_s11, 32, %s700_s0, %s273_s20  }
  0xcd PF: > { %s300_s25 = sand.u32 1, %s552_s14   ;;  %p751_p0 = scmp.ge.s32.totalorder %s572_s19, 2 }
  0xce   : > { %s301_s8 = scalar_lea.sflag [#allocation5], %s300_s25 }
  0xcf   : > { %p408_p2 = pnand %p751_p0, %p660_p11 }
  0xd1   : > { %p409_p3 = pneg %p408_p2 }
  0xd3   : > { %547 = dma.done.wait (%p409_p3), %s301_s8, 32  }
  0xd4   : > { %549 = vsyncadd (%p409_p3), %s301_s8, 4294967264  ;;  %s20_s19 = sadd.s32 1, %s572_s19   ;;  %s752_s14 = smov %s556_s15 }
  0xd5   : > { %p17_p5 = scmp.ge.s32.totalorder %s20_s19, 4   ;;  %s753_s15 = smov %s560_s16 }
  0xd6   : > { %s754_s16 = smov %s658_s27  ;;  %s755_s17 = smov %s568_s18 }
  0xd7   : > { %s756_s18 = smov %s758_s21  ;;  %19 = sbr.rel (!%p17_p5) target bundleno = 8 (0x8), region = 80 }
  0xdc   :  { %306 = vsyncpa [#allocation4], 1 }
  0xdd   :  { %308 = vsyncpa [#allocation4 + $0x1], 1 }
  0xde   :  { %309 = vsyncpa [#allocation5], 1 }
  0xdf   :  { %311 = vsyncpa [#allocation5 + $0x1], 1 }

</bundles_post_ra>
